<compile_context>
chip_gen: v6e
topology: v6e:2x2x1
jax: 0.10.0
libtpu: 0.0.40
codegen_flags: <defaults>
</compile_context>

<pallas_src>
import functools

import jax
import jax.numpy as jnp
from jax.experimental import pallas as pl
from jax.experimental.pallas import tpu as pltpu


def _round_up(v, m):
    return ((v + m - 1) // m) * m


@functools.lru_cache(maxsize=1)
def _tpu_config():
    """Per-generation (VMEM budget, scoped vmem limit, row-tile cap)."""
    mib = 1024 * 1024
    vmem = None
    try:
        vmem = int(pltpu.get_tpu_info().vmem_capacity_bytes)
    except Exception:
        vmem = None
    kind = ""
    try:
        kind = jax.devices()[0].device_kind.lower()
    except Exception:
        pass
    if vmem is None:
        vmem = 64 * mib if ("v7" in kind or not kind) else 128 * mib

    if vmem <= 64 * mib:                 # v7x-class: 64 MiB per TensorCore
        budget, limit, tm_cap = 40 * mib, 48 * mib, 512
    else:                                # v5e / v6e: 128 MiB
        budget, limit = 88 * mib, 100 * mib
        if "v5" in kind:
            tm_cap = 256                 # single vst slot, lower HBM BW
        elif "v6" in kind:
            tm_cap = 1024
        else:
            tm_cap = 512
    return budget, limit, tm_cap


def _block_spec(block_shape, index_map, buffers=None):
    """BlockSpec with an optional explicit buffer count.

    Buffered(1) is used for the resident weight / bias (constant index map =>
    no revolving needed), halving their VMEM footprint.
    """
    if buffers is None:
        return pl.BlockSpec(block_shape, index_map)
    try:
        return pl.BlockSpec(block_shape, index_map, pipeline_mode=pl.Buffered(buffers))
    except TypeError:  # older jax without pipeline_mode: fall back to default
        return pl.BlockSpec(block_shape, index_map)


# ----------------------------- kernels --------------------------------------


def _resident_kernel(x_ref, w_ref, b_ref, o_ref):
    # x_ref: (TM, Dp)  w_ref: (Dp, Dp)  b_ref: (1, Dp)  o_ref: (TM, Dp)
    x = x_ref[...]
    xd = x.astype(w_ref.dtype) if x.dtype != w_ref.dtype else x
    y = jnp.dot(xd, w_ref[...], preferred_element_type=jnp.float32)   # fn(x)
    o_ref[...] = (y + b_ref[...] + x.astype(jnp.float32)).astype(o_ref.dtype)


def _ntiled_kernel(x_ref, xr_ref, w_ref, b_ref, o_ref):
    # x_ref : (TM, Dp) full rows (matmul lhs, held in VMEM across j)
    # xr_ref: (TM, TN) residual panel for this (i, j)
    # w_ref : (Dp, TN) weight column panel   b_ref: (1, TN)   o_ref: (TM, TN)
    x = x_ref[...]
    xd = x.astype(w_ref.dtype) if x.dtype != w_ref.dtype else x
    y = jnp.dot(xd, w_ref[...], preferred_element_type=jnp.float32)
    o_ref[...] = (y + b_ref[...] + xr_ref[...].astype(jnp.float32)).astype(o_ref.dtype)


# --------------------------- tiling selection --------------------------------


def _pick_tm(M, cap, row_align):
    """Largest aligned row tile <= cap, preferring an exact divisor of M so the
    wrapper never pads / slices the activation (extra HBM passes)."""
    cap = max(row_align, (min(cap, _round_up(M, row_align)) // row_align) * row_align)
    threshold = min(cap, M, 128)
    t = (min(cap, M) // row_align) * row_align
    while t >= row_align:
        if M % t == 0:
            if t >= threshold:
                return t, False          # exact divisor, no padding needed
            break                        # divisor too small -> padding is cheaper
        t -= row_align
    return cap, True                     # pad M up to a multiple of cap


def _select_tiling(M, D_pad, x_isz, w_isz, budget, tm_cap, row_align,
                   tm, tn, force_n_tiled):
    # Resident path VMEM: 1x W (Buffered(1)) + 1x bias + 2x in + 2x out row tiles.
    w_resident = D_pad * D_pad * w_isz + D_pad * 4
    min_rows = min(128, _round_up(M, row_align))
    resident_fits = (w_resident + 4 * min_rows * D_pad * x_isz) <= budget

    if resident_fits and not force_n_tiled:
        if tm is None:
            rows = (budget - w_resident) // (4 * D_pad * x_isz)
            tm, need_pad = _pick_tm(M, min(rows, tm_cap), row_align)
        else:
            tm = max(row_align, (tm // row_align) * row_align)
            need_pad = (M % tm) != 0
        return "resident", tm, None, need_pad

    # ---- N-tiled fallback: W streamed as column panels over grid axis j ----
    if tm is None:
        tm, need_pad = _pick_tm(M, min(tm_cap, 256), row_align)
    else:
        tm = max(row_align, (tm // row_align) * row_align)
        need_pad = (M % tm) != 0
    if tn is None:
        fixed = 2 * tm * D_pad * x_isz                       # x row tile (2 bufs)
        per_tn = 2 * D_pad * w_isz + 4 * tm * x_isz + 8      # W + out + residual + bias
        tn = max(budget - fixed, 0) // per_tn
        tn = max(128, (tn // 128) * 128)
    else:
        tn = max(128, (tn // 128) * 128)
    tn = min(tn, D_pad)
    while D_pad % tn != 0:               # keep N blocks exact (no ragged tile)
        tn -= 128
    return "ntiled", tm, tn, need_pad


# ------------------------------ wrapper --------------------------------------


@functools.partial(
    jax.jit,
    static_argnames=("tm", "tn", "cast_to_bf16", "force_n_tiled", "vmem_limit_bytes"))
def residual_add_linear(x, w, b, *, tm=None, tn=None, cast_to_bf16=False,
                        force_n_tiled=False, vmem_limit_bytes=None):
    """out = x @ w + b + x   with x: (B, S, D), w: (D, D) (in, out), b: (D,)."""
    B, S, D = x.shape
    M = B * S
    dtype = x.dtype
    x_isz = jnp.dtype(dtype).itemsize

    budget, limit, tm_cap = _tpu_config()
    if vmem_limit_bytes is None:
        vmem_limit_bytes = limit

    w_dtype = jnp.bfloat16 if (cast_to_bf16 and w.dtype == jnp.float32) else w.dtype
    w_isz = jnp.dtype(w_dtype).itemsize

    # Lane-dense hidden dim (multiple of 128); zero padding is exact for the
    # matmul and only materialized when D is not already 128-aligned.
    D_pad = _round_up(D, 128)
    row_align = 8 if x_isz >= 4 else (16 if x_isz == 2 else 32)

    mode, tm, tn, _ = _select_tiling(
        M, D_pad, x_isz, w_isz, budget, tm_cap, row_align, tm, tn, force_n_tiled)
    n_m = pl.cdiv(M, tm)
    M_pad = n_m * tm

    x2 = x.reshape(M, D)
    if (M_pad, D_pad) != (M, D):
        x2 = jnp.pad(x2, ((0, M_pad - M), (0, D_pad - D)))
    w_p = w.astype(w_dtype)
    if D_pad != D:
        w_p = jnp.pad(w_p, ((0, D_pad - D), (0, D_pad - D)))
        b_p = jnp.pad(b, (0, D_pad - D))
    else:
        b_p = b
    b2 = b_p.reshape(1, D_pad).astype(jnp.float32)

    if mode == "resident":
        cparams = pltpu.CompilerParams(
            dimension_semantics=("parallel",),
            vmem_limit_bytes=vmem_limit_bytes,
        )
        out2 = pl.pallas_call(
            _resident_kernel,
            out_shape=jax.ShapeDtypeStruct((M_pad, D_pad), dtype),
            grid_spec=pltpu.PrefetchScalarGridSpec(
                num_scalar_prefetch=0,
                grid=(n_m,),
                in_specs=[
                    _block_spec((tm, D_pad), lambda i: (i, 0)),          # x row tile
                    _block_spec((D_pad, D_pad), lambda i: (0, 0), 1),    # W resident
                    _block_spec((1, D_pad), lambda i: (0, 0), 1),        # bias resident
                ],
                out_specs=_block_spec((tm, D_pad), lambda i: (i, 0)),
            ),
            compiler_params=cparams,
            input_output_aliases={0: 0},   # reuse x2's HBM buffer for the output
        )(x2, w_p, b2)
    else:
        n_n = D_pad // tn
        cparams = pltpu.CompilerParams(
            dimension_semantics=("parallel", "arbitrary"),
            vmem_limit_bytes=vmem_limit_bytes,
        )
        out2 = pl.pallas_call(
            _ntiled_kernel,
            out_shape=jax.ShapeDtypeStruct((M_pad, D_pad), dtype),
            grid_spec=pltpu.PrefetchScalarGridSpec(
                num_scalar_prefetch=0,
                grid=(n_m, n_n),
                in_specs=[
                    _block_spec((tm, D_pad), lambda i, j: (i, 0)),   # x rows (held over j)
                    _block_spec((tm, tn), lambda i, j: (i, j)),      # residual panel
                    _block_spec((D_pad, tn), lambda i, j: (0, j)),   # W column panel
                    _block_spec((1, tn), lambda i, j: (0, j)),       # bias panel
                ],
                out_specs=_block_spec((tm, tn), lambda i, j: (i, j)),
            ),
            compiler_params=cparams,
        )(x2, x2, w_p, b2)

    if (M_pad, D_pad) != (M, D):
        out2 = out2[:M, :D]
    return out2.reshape(B, S, D)


def residual_add_reference(x, w, b):
    return jnp.einsum("bsd,de->bse", x, w) + b + x


if __name__ == "__main__":
    key = jax.random.PRNGKey(0)
    kx, kw, kb = jax.random.split(key, 3)

    # --- test 1: module-sized small shape (D=32 -> padded to 128 lanes) -----
    B, S, D = 2, 8, 32
    x = jax.random.normal(kx, (B, S, D), dtype=jnp.float32)
    w = jax.random.normal(kw, (D, D), dtype=jnp.float32) * 0.05   # nn.Linear weight (in,out)
    b = jax.random.normal(kb, (D,), dtype=jnp.float32) * 0.01

    out = jax.block_until_ready(residual_add_linear(x, w, b))
    ref = residual_add_reference(x, w, b)
    assert out.shape == (B, S, D)
    assert jnp.allclose(out, ref, atol=1e-2, rtol=1e-2), "mismatch vs reference (test 1)"

    # --- test 2: multi-tile M grid, resident-W path, no M-axis padding ------
    B2, S2, D2 = 2, 384, 256          # M = 768 -> three 256-row tiles, no pad
    k1, k2, k3 = jax.random.split(jax.random.PRNGKey(1), 3)
    x2 = jax.random.normal(k1, (B2, S2, D2), dtype=jnp.float32)
    w2 = jax.random.normal(k2, (D2, D2), dtype=jnp.float32) * 0.05
    b2 = jax.random.normal(k3, (D2,), dtype=jnp.float32) * 0.01
    ref2 = residual_add_reference(x2, w2, b2)

    out2 = jax.block_until_ready(residual_add_linear(x2, w2, b2, tm=256))
    assert out2.shape == (B2, S2, D2)
    assert jnp.allclose(out2, ref2, atol=2e-2, rtol=2e-2), "mismatch vs reference (test 2)"

    # --- test 3: forced N-tiled fallback (large-D path, W streamed) ---------
    out3 = jax.block_until_ready(
        residual_add_linear(x2, w2, b2, tm=256, tn=128, force_n_tiled=True))
    assert jnp.allclose(out3, ref2, atol=2e-2, rtol=2e-2), "mismatch vs reference (test 3)"

    # --- test 4: opt-in bf16 weight/dot path (MXU-native on v6e/v7x) --------
    out4 = jax.block_until_ready(residual_add_linear(x, w, b, cast_to_bf16=True))
    assert jnp.allclose(out4, ref, atol=5e-2, rtol=5e-2), "mismatch vs reference (test 4)"

    print("KERNEL_OK")
</pallas_src>

<mosaic_0001>
module attributes {stable_mosaic.version = 11 : i64} {
  func.func @_resident_kernel(%arg0: i32, %arg1: memref<16x128xf32, #tpu.memory_space<vmem>>, %arg2: memref<128x128xf32, #tpu.memory_space<vmem>>, %arg3: memref<1x128xf32, #tpu.memory_space<vmem>>, %arg4: memref<16x128xf32, #tpu.memory_space<vmem>>) attributes {dimension_semantics = [#tpu.dimension_semantics<parallel>], iteration_bounds = array<i64: 1>, scalar_prefetch = 0 : i64, scratch_operands = 0 : i64, tpu.core_type = #tpu.core_type<tc>, window_params = [{transform_indices = @transform_0, window_bounds = array<i64: 16, 128>}, {pipeline_mode = #tpu.pipeline_mode<synchronous>, transform_indices = @transform_1, window_bounds = array<i64: 128, 128>}, {pipeline_mode = #tpu.pipeline_mode<synchronous>, transform_indices = @transform_2, window_bounds = array<i64: 1, 128>}, {transform_indices = @transform_3, window_bounds = array<i64: 16, 128>}]} {
    %c0 = arith.constant 0 : index
    %c0_0 = arith.constant 0 : index
    %0 = vector.load %arg1[%c0, %c0_0] : memref<16x128xf32, #tpu.memory_space<vmem>>, vector<16x128xf32>
    %c0_1 = arith.constant 0 : index
    %c0_2 = arith.constant 0 : index
    %1 = vector.load %arg2[%c0_1, %c0_2] : memref<128x128xf32, #tpu.memory_space<vmem>>, vector<128x128xf32>
    %cst = arith.constant dense<0.000000e+00> : vector<16x128xf32>
    %2 = tpu.matmul %0, %1, %cst {dimension_numbers = #tpu.dot_dimension_numbers<[1], [0], [0], [1], [0, 0, 1, 1], [], []>} : vector<16x128xf32>, vector<128x128xf32>, vector<16x128xf32> -> vector<16x128xf32>
    %c0_3 = arith.constant 0 : index
    %c0_4 = arith.constant 0 : index
    %3 = vector.load %arg3[%c0_3, %c0_4] : memref<1x128xf32, #tpu.memory_space<vmem>>, vector<1x128xf32>
    %4 = vector.broadcast %3 : vector<1x128xf32> to vector<16x128xf32>
    %5 = arith.addf %2, %4 : vector<16x128xf32>
    %6 = arith.addf %5, %0 : vector<16x128xf32>
    %c0_5 = arith.constant 0 : index
    %c0_6 = arith.constant 0 : index
    %7 = vector.load %arg4[%c0_5, %c0_6] : memref<16x128xf32, #tpu.memory_space<vmem>>, vector<16x128xf32>
    tpu.vector_store %arg4[%c0_5, %c0_6], %6 {strides = array<i32>} : memref<16x128xf32, #tpu.memory_space<vmem>>, vector<16x128xf32>,
    return
  }
  func.func @transform_0(%arg0: i32) -> (i32, i32) {
    %c0_i32 = arith.constant 0 : i32
    %c0_i32_0 = arith.constant 0 : i32
    return %arg0, %c0_i32 : i32, i32
  }
  func.func @transform_1(%arg0: i32) -> (i32, i32) {
    %c0_i32 = arith.constant 0 : i32
    %c0_i32_0 = arith.constant 0 : i32
    %c0_i32_1 = arith.constant 0 : i32
    return %c0_i32, %c0_i32_0 : i32, i32
  }
  func.func @transform_2(%arg0: i32) -> (i32, i32) {
    %c0_i32 = arith.constant 0 : i32
    %c0_i32_0 = arith.constant 0 : i32
    %c0_i32_1 = arith.constant 0 : i32
    return %c0_i32, %c0_i32_0 : i32, i32
  }
  func.func @transform_3(%arg0: i32) -> (i32, i32) {
    %c0_i32 = arith.constant 0 : i32
    %c0_i32_0 = arith.constant 0 : i32
    return %arg0, %c0_i32 : i32, i32
  }
}

</mosaic_0001>

<bundles_post_ra>
// kernel: residual_add_linear.1
= control target key start
LH: loop header
LB: loop body
LE: loop exit
PB: predicated region body
PF: predicated region fallthrough
CT: control target
= control target key end

     0   :  { %s259_s1 = inlined_call_operand.vmem [shape: f32[128,128], index: 1, kind: input, shape index: {}]   ;;  %s260_s0 = inlined_call_operand.vmem [shape: f32[16,128], index: 0, kind: input, shape index: {}, may-alias: {0,3}]   ;;  %s261_s2 = inlined_call_operand.vmem [shape: f32[1,128], index: 2, kind: input, shape index: {}]   ;;  %s262_s3 = inlined_call_operand.vmem [shape: f32[16,128], index: 3, kind: output, shape index: {}, may-alias: {0,3}]  }
   0x1   :  { %v31_v0 = vld [vmem:[%s259_s1 + $0x78] sm:$0xff]  ;;  %v30_v1 = vld [vmem:[%s259_s1 + $0x70] sm:$0xff]  ;;  %v29_v2 = vld [vmem:[%s259_s1 + $0x68] sm:$0xff] }
   0x2   :  { %141 = vmatprep.subr.mxu0 %v31_v0  ;;  %v28_v3 = vld [vmem:[%s259_s1 + $0x60] sm:$0xff]  ;;  %v27_v5 = vld [vmem:[%s259_s1 + $0x58] sm:$0xff]  ;;  %v26_v6 = vld [vmem:[%s259_s1 + $0x50] sm:$0xff] }
   0x3   :  { %142 = vmatpush3.msra.mxu0 %v31_v0  ;;  %v14_v4 = vld [vmem:[%s260_s0] sm:$0xff]  ;;  %v25_v7 = vld [vmem:[%s259_s1 + $0x48] sm:$0xff]  ;;  %v23_v9 = vld [vmem:[%s259_s1 + $0x38] sm:$0xff] }
   0x4   :  { %143 = vmatprep.subr.mxu0 %v30_v1  ;;  %173 = vmatprep.mubr.f32.mxu0 %v14_v4  ;;  %v24_v8 = vld [vmem:[%s259_s1 + $0x40] sm:$0xff]  ;;  %v22_v10 = vld [vmem:[%s259_s1 + $0x30] sm:$0xff]  ;;  %v21_v11 = vld [vmem:[%s259_s1 + $0x28] sm:$0xff] }
   0x5   :  { %144 = vmatpush3.msra.mxu0 %v30_v1  ;;  %v20_v12 = vld [vmem:[%s259_s1 + $0x20] sm:$0xff]  ;;  %v19_v13 = vld [vmem:[%s259_s1 + $0x18] sm:$0xff]  ;;  %v18_v14 = vld [vmem:[%s259_s1 + $0x10] sm:$0xff] }
   0x6   :  { %145 = vmatprep.subr.mxu0 %v29_v2  ;;  %v17_v15 = vld [vmem:[%s259_s1 + $0x8] sm:$0xff]  ;;  %v16_v16 = vld [vmem:[%s259_s1] sm:$0xff] }
   0x7   :  { %146 = vmatpush3.msra.mxu0 %v29_v2  ;;  %v15_v17 = vld [vmem:[%s260_s0 + $0x8] sm:$0xff]  ;;  %v122_v18 = vld [vmem:[%s261_s2] ss:$0 sm:$0xff] }
   0x8   :  { %147 = vmatprep.subr.mxu0 %v28_v3 }
   0x9   :  { %148 = vmatpush3.msra.mxu0 %v28_v3 }
   0xa   :  { %149 = vmatprep.subr.mxu0 %v27_v5 }
   0xb   :  { %150 = vmatpush3.msra.mxu0 %v27_v5 }
   0xc   :  { %151 = vmatprep.subr.mxu0 %v26_v6 }
   0xd   :  { %152 = vmatpush3.msra.mxu0 %v26_v6 }
   0xe   :  { %153 = vmatprep.subr.mxu0 %v25_v7 }
   0xf   :  { %154 = vmatpush3.msra.mxu0 %v25_v7 }
  0x10   :  { %155 = vmatprep.subr.mxu0 %v24_v8 }
  0x11   :  { %156 = vmatpush3.msra.mxu0 %v24_v8 }
  0x12   :  { %157 = vmatprep.subr.mxu0 %v23_v9 }
  0x13   :  { %158 = vmatpush3.msra.mxu0 %v23_v9 }
  0x14   :  { %159 = vmatprep.subr.mxu0 %v22_v10 }
  0x15   :  { %160 = vmatpush3.msra.mxu0 %v22_v10 }
  0x16   :  { %161 = vmatprep.subr.mxu0 %v21_v11 }
  0x17   :  { %162 = vmatpush3.msra.mxu0 %v21_v11 }
  0x18   :  { %163 = vmatprep.subr.mxu0 %v20_v12 }
  0x19   :  { %164 = vmatpush3.msra.mxu0 %v20_v12 }
  0x1a   :  { %165 = vmatprep.subr.mxu0 %v19_v13 }
  0x1b   :  { %166 = vmatpush3.msra.mxu0 %v19_v13 }
  0x1c   :  { %167 = vmatprep.subr.mxu0 %v18_v14 }
  0x1d   :  { %168 = vmatpush3.msra.mxu0 %v18_v14 }
  0x1e   :  { %169 = vmatprep.subr.mxu0 %v17_v15 }
  0x1f   :  { %170 = vmatpush3.msra.mxu0 %v17_v15 }
  0x20   :  { %171 = vmatprep.subr.mxu0 %v16_v16 }
  0x21   :  { %172 = vmatpush3.msra.mxu0 %v16_v16 }
  0x22   :  { %174 = vmatmul.mubr.f32.vlgmr.msra.gmra.mxu0 %v15_v17 }
  0xe2   :  { %v175_v19 = vpop.f32.mrf.mxu0 }
  0xe3   :  { %v111_v20 = vadd.f32 %v175_v19, %v122_v18 }
  0xe4   :  { %v105_v21 = vpop.f32.mrf.mxu0 }
  0xe5   :  { %v115_v22 = vadd.f32 %v111_v20, %v15_v17  ;;  %v106_v23 = vadd.f32 %v122_v18, %v105_v21 }
  0xe7   :  { %117 = vst [vmem:[%s262_s3 + $0x8] sm:$0xff] %v115_v22  ;;  %v114_v24 = vadd.f32 %v106_v23, %v14_v4 }
  0xe9   :  { %116 = vst [vmem:[%s262_s3] sm:$0xff] %v114_v24 }

</bundles_post_ra>
